<compile_context>
chip_gen: v7x
topology: tpu7x:2x2x1
jax: 0.10.0
libtpu: 0.0.40
codegen_flags: <defaults>
</compile_context>

<pallas_src>
import jax
import jax.numpy as jnp
from jax import lax
from jax.experimental import pallas as pl
from jax.experimental.pallas import tpu as pltpu


def _xent_tile_kernel(pred_ref, label_ref, wi_ref, numer_ref, denom_ref):
    # pred_ref:  (TILE_N, C) logits, native dtype (f32 or bf16)
    # label_ref: (TILE_N, 1) int32 class indices (-1 for padded rows)
    # wi_ref:    (TILE_N, 1) f32 per-sample weights (0 for padded rows)
    # numer_ref / denom_ref: (1, 1) f32 SMEM partial outputs for this tile
    logits = pred_ref[...].astype(jnp.float32)                        # (T, C)
    labels = label_ref[...]                                           # (T, 1)
    w_i = wi_ref[...]                                                 # (T, 1)
    t, c = logits.shape

    # numerically-stable log-sum-exp
    row_max = jnp.max(logits, axis=-1, keepdims=True)                 # (T, 1)
    shifted = logits - row_max                                        # (T, C)
    lse = jnp.log(jnp.sum(jnp.exp(shifted), axis=-1, keepdims=True))  # (T, 1)

    # pick the target logit with a where-mask (inf-safe, no one-hot multiply)
    iota = lax.broadcasted_iota(jnp.int32, (t, c), 1)                 # (T, C)
    mask = iota == labels                                             # (T, C)
    picked = jnp.sum(jnp.where(mask, shifted, 0.0),
                     axis=-1, keepdims=True)                          # (T, 1)

    nll = w_i * (lse - picked)              # (T, 1); padded rows contribute 0
    numer_ref[0, 0] = jnp.sum(nll)
    denom_ref[0, 0] = jnp.sum(w_i)


def _choose_tile_n(n, c, itemsize):
    # One prediction buffer; BlockSpec double-buffers, so the resident logits
    # footprint is ~2x this.  8 MiB/buffer stays comfortably inside the scoped
    # VMEM budget on every generation (incl. v7x's 64 MiB physical VMEM).
    budget_bytes = 8 * 1024 * 1024
    max_rows = max(8, budget_bytes // max(1, c * itemsize))
    tile = max(8, (min(1024, max_rows) // 8) * 8)       # multiple of 8, <=1024
    n_pad8 = ((n + 7) // 8) * 8
    return min(tile, n_pad8)


def cross_entropy_loss_pallas(prediction, label, weight=None):
    """prediction: (N, C) float (f32/bf16), label: (N,) int, weight: (C,) or None."""
    n, c = prediction.shape
    label = label.astype(jnp.int32)

    # Per-sample weights: tiny N-element gather done once outside the kernel.
    # NOTE: out-of-range labels clamp here (PyTorch would raise); denom == 0
    # (all selected weights zero) yields NaN, matching PyTorch's 0/0.
    if weight is None:
        w_i = jnp.ones((n,), dtype=jnp.float32)
    else:
        w_i = jnp.asarray(weight, dtype=jnp.float32)[label]

    tile_n = _choose_tile_n(n, c, jnp.dtype(prediction.dtype).itemsize)
    num_tiles = pl.cdiv(n, tile_n)
    n_pad = num_tiles * tile_n

    pred = prediction                       # keep native dtype; cast in-kernel
    labels2d = label.reshape(n, 1)
    wi2d = w_i.reshape(n, 1)
    if n_pad != n:
        pad = n_pad - n
        pred = jnp.pad(pred, ((0, pad), (0, 0)))
        labels2d = jnp.pad(labels2d, ((0, pad), (0, 0)), constant_values=-1)
        wi2d = jnp.pad(wi2d, ((0, pad), (0, 0)))

    # TODO(synk): for vocab-scale C (>= ~8K classes) add a second grid axis
    # over C with an online (flash-style) LSE instead of a full-C row block.

    numer_parts, denom_parts = pl.pallas_call(
        _xent_tile_kernel,
        out_shape=(
            jax.ShapeDtypeStruct((num_tiles, 1), jnp.float32),
            jax.ShapeDtypeStruct((num_tiles, 1), jnp.float32),
        ),
        grid=(num_tiles,),
        in_specs=[
            pl.BlockSpec((tile_n, c), lambda i: (i, 0)),
            pl.BlockSpec((tile_n, 1), lambda i: (i, 0)),
            pl.BlockSpec((tile_n, 1), lambda i: (i, 0)),
        ],
        out_specs=(
            pl.BlockSpec((1, 1), lambda i: (i, 0),
                         memory_space=pltpu.MemorySpace.SMEM),
            pl.BlockSpec((1, 1), lambda i: (i, 0),
                         memory_space=pltpu.MemorySpace.SMEM),
        ),
        compiler_params=pltpu.CompilerParams(
            dimension_semantics=("parallel",),
            vmem_limit_bytes=48 * 1024 * 1024,
        ),
    )(pred, labels2d, wi2d)

    return jnp.sum(numer_parts) / jnp.sum(denom_parts)


class ClassLoss:
    """JAX/Pallas port of torchlab ClassLoss (CrossEntropyLoss, reduction='mean')."""

    def __init__(self, conf=None, weight=None, ngpus=None):
        self.conf = conf
        self.weight = None if weight is None else jnp.asarray(weight, dtype=jnp.float32)

    def __call__(self, prediction, sample):
        label = jnp.asarray(sample['label']).astype(jnp.int32)
        total_loss = cross_entropy_loss_pallas(prediction, label, self.weight)
        loss_dict = {'total_loss': total_loss}
        return total_loss, loss_dict


if __name__ == "__main__":
    key = jax.random.PRNGKey(0)
    batch, num_classes = 10, 32          # N not a multiple of 8 -> exercises padding

    k_pred, k_lab = jax.random.split(key)
    prediction = jax.random.normal(k_pred, (batch, num_classes), dtype=jnp.float32)
    label = jax.random.randint(k_lab, (batch,), 0, num_classes, dtype=jnp.int32)

    # deterministic per-class weights (synthetic, not a checkpoint load)
    weight = 0.5 + jnp.arange(num_classes, dtype=jnp.float32) / num_classes

    # weighted case
    loss_mod = ClassLoss(conf=None, weight=weight)
    total_loss, loss_dict = loss_mod(prediction, {'label': label})
    jax.block_until_ready(total_loss)

    logp = jax.nn.log_softmax(prediction, axis=-1)
    w_sel = weight[label]
    ref = jnp.sum(-w_sel * logp[jnp.arange(batch), label]) / jnp.sum(w_sel)
    assert jnp.allclose(total_loss, ref, rtol=1e-5, atol=1e-5), (total_loss, ref)

    # unweighted case (weight=None -> plain mean)
    loss_u, _ = ClassLoss(conf=None)(prediction, {'label': label})
    jax.block_until_ready(loss_u)
    ref_u = -jnp.mean(logp[jnp.arange(batch), label])
    assert jnp.allclose(loss_u, ref_u, rtol=1e-5, atol=1e-5), (loss_u, ref_u)

    print("KERNEL_OK")
</pallas_src>

<mosaic_0001>
module attributes {stable_mosaic.version = 11 : i64} {
  func.func @_xent_tile_kernel(%arg0: i32, %arg1: memref<16x32xf32, #tpu.memory_space<vmem>>, %arg2: memref<16x1xi32, #tpu.memory_space<vmem>>, %arg3: memref<16x1xf32, #tpu.memory_space<vmem>>, %arg4: memref<1x1xf32, #tpu.memory_space<smem>>, %arg5: memref<1x1xf32, #tpu.memory_space<smem>>) attributes {dimension_semantics = [#tpu.dimension_semantics<parallel>], iteration_bounds = array<i64: 1>, scalar_prefetch = 0 : i64, scratch_operands = 0 : i64, tpu.core_type = #tpu.core_type<tc>, window_params = [{transform_indices = @transform_0, window_bounds = array<i64: 16, 32>}, {transform_indices = @transform_1, window_bounds = array<i64: 16, 1>}, {transform_indices = @transform_2, window_bounds = array<i64: 16, 1>}, {transform_indices = @transform_3, window_bounds = array<i64: 1, 1>}, {transform_indices = @transform_4, window_bounds = array<i64: 1, 1>}]} {
    %c0 = arith.constant 0 : index
    %c0_0 = arith.constant 0 : index
    %0 = vector.load %arg1[%c0, %c0_0] : memref<16x32xf32, #tpu.memory_space<vmem>>, vector<16x32xf32>
    %c0_1 = arith.constant 0 : index
    %c0_2 = arith.constant 0 : index
    %1 = vector.load %arg2[%c0_1, %c0_2] : memref<16x1xi32, #tpu.memory_space<vmem>>, vector<16x1xi32>
    %c0_3 = arith.constant 0 : index
    %c0_4 = arith.constant 0 : index
    %2 = vector.load %arg3[%c0_3, %c0_4] : memref<16x1xf32, #tpu.memory_space<vmem>>, vector<16x1xf32>
    %cst = arith.constant dense<0xFF800000> : vector<16xf32>
    %3 = vector.multi_reduction <maximumf>, %0, %cst [1] : vector<16x32xf32> to vector<16xf32>
    %4 = vector.shape_cast %3 : vector<16xf32> to vector<16x1xf32>
    %5 = vector.broadcast %4 : vector<16x1xf32> to vector<16x32xf32>
    %6 = arith.subf %0, %5 : vector<16x32xf32>
    %7 = math.exp %6 : vector<16x32xf32>
    %cst_5 = arith.constant dense<0.000000e+00> : vector<16xf32>
    %8 = vector.multi_reduction <add>, %7, %cst_5 [1] : vector<16x32xf32> to vector<16xf32>
    %9 = vector.shape_cast %8 : vector<16xf32> to vector<16x1xf32>
    %10 = math.log %9 : vector<16x1xf32>
    %11 = tpu.iota {dimensions = array<i32: 1>} : vector<16x32xi32>
    %12 = vector.broadcast %1 : vector<16x1xi32> to vector<16x32xi32>
    %13 = arith.cmpi eq, %11, %12 : vector<16x32xi32>
    %cst_6 = arith.constant 0.000000e+00 : f32
    %14 = vector.broadcast %cst_6 : f32 to vector<16x32xf32>
    %15 = arith.select %13, %6, %14 : vector<16x32xi1>, vector<16x32xf32>
    %cst_7 = arith.constant dense<0.000000e+00> : vector<16xf32>
    %16 = vector.multi_reduction <add>, %15, %cst_7 [1] : vector<16x32xf32> to vector<16xf32>
    %17 = vector.shape_cast %16 : vector<16xf32> to vector<16x1xf32>
    %18 = arith.subf %10, %17 : vector<16x1xf32>
    %19 = arith.mulf %2, %18 : vector<16x1xf32>
    %20 = vector.shape_cast %19 : vector<16x1xf32> to vector<1x16x1xf32>
    %cst_8 = arith.constant dense<0.000000e+00> : vector<1xf32>
    %21 = vector.multi_reduction <add>, %20, %cst_8 [1, 2] : vector<1x16x1xf32> to vector<1xf32>
    %22 = vector.shape_cast %21 : vector<1xf32> to vector<1x1x1xf32>
    %23 = vector.extract %22[0, 0, 0] : f32 from vector<1x1x1xf32>
    %c0_9 = arith.constant 0 : index
    %c0_10 = arith.constant 0 : index
    %24 = memref.load %arg4[%c0_9, %c0_10] : memref<1x1xf32, #tpu.memory_space<smem>>
    memref.store %23, %arg4[%c0_9, %c0_10] : memref<1x1xf32, #tpu.memory_space<smem>>
    %25 = vector.shape_cast %2 : vector<16x1xf32> to vector<1x16x1xf32>
    %cst_11 = arith.constant dense<0.000000e+00> : vector<1xf32>
    %26 = vector.multi_reduction <add>, %25, %cst_11 [1, 2] : vector<1x16x1xf32> to vector<1xf32>
    %27 = vector.shape_cast %26 : vector<1xf32> to vector<1x1x1xf32>
    %28 = vector.extract %27[0, 0, 0] : f32 from vector<1x1x1xf32>
    %c0_12 = arith.constant 0 : index
    %c0_13 = arith.constant 0 : index
    %29 = memref.load %arg5[%c0_12, %c0_13] : memref<1x1xf32, #tpu.memory_space<smem>>
    memref.store %28, %arg5[%c0_12, %c0_13] : memref<1x1xf32, #tpu.memory_space<smem>>
    return
  }
  func.func @transform_0(%arg0: i32) -> (i32, i32) {
    %c0_i32 = arith.constant 0 : i32
    %c0_i32_0 = arith.constant 0 : i32
    return %arg0, %c0_i32 : i32, i32
  }
  func.func @transform_1(%arg0: i32) -> (i32, i32) {
    %c0_i32 = arith.constant 0 : i32
    %c0_i32_0 = arith.constant 0 : i32
    return %arg0, %c0_i32 : i32, i32
  }
  func.func @transform_2(%arg0: i32) -> (i32, i32) {
    %c0_i32 = arith.constant 0 : i32
    %c0_i32_0 = arith.constant 0 : i32
    return %arg0, %c0_i32 : i32, i32
  }
  func.func @transform_3(%arg0: i32) -> (i32, i32) {
    %c0_i32 = arith.constant 0 : i32
    %c0_i32_0 = arith.constant 0 : i32
    return %arg0, %c0_i32 : i32, i32
  }
  func.func @transform_4(%arg0: i32) -> (i32, i32) {
    %c0_i32 = arith.constant 0 : i32
    %c0_i32_0 = arith.constant 0 : i32
    return %arg0, %c0_i32 : i32, i32
  }
}

</mosaic_0001>

<bundles_post_ra>
// kernel: tpu_custom_call.1
= control target key start
LH: loop header
LB: loop body
LE: loop exit
PB: predicated region body
PF: predicated region fallthrough
CT: control target
= control target key end

     0   :  { %10 = vsyncpa [#allocation3], 0  ;;  %vm24_vm0 = vcmask 261120   ;;  %v164_v4 = vmov 0   ;;  %s240_s0 = inlined_call_operand.vmem [shape: f32[16,32], index: 0, kind: input, shape index: {}]   ;;  %s241_s1 = inlined_call_operand.vmem [shape: s32[16,1], index: 1, kind: input, shape index: {}]   ;;  %s242_s2 = inlined_call_operand.vmem [shape: f32[16,1], index: 2, kind: input, shape index: {}]   ;;  %s243_s3 = inlined_call_operand.hbm [shape: f32[1,1], index: 3, kind: output, shape index: {0}]   ;;  %s244_s4 = inlined_call_operand.hbm [shape: f32[1,1], index: 4, kind: output, shape index: {1}]  }
   0x1   :  { %v18_v0 = vld [vmem:[%s240_s0] sm:$0xff]  ;;  %v19_v1 = vld [vmem:[%s240_s0 + $0x8] sm:$0xff]  ;;  %130 = vset.pattern.permute.xlu1 %v164_v4  ;;  %131 = vset.pattern.permute.xlu0 %v164_v4 }
   0x2   :  { %v20_v2 = vld [vmem:[%s241_s1] sm:$0xff]  ;;  %v25_v3 = vsel %vm24_vm0, %v18_v0, -inf }
   0x3   :  { %11 = vsyncpa [#allocation5], 0  ;;  %26 = vmax.xlane.f32.xlu0 %v25_v3  ;;  %50 = vperm.xlu1 %130, %v20_v2   ;;  %v28_v5 = vsel %vm24_vm0, %v19_v1, -inf  ;;  %v21_v6 = vld [vmem:[%s241_s1 + $0x8] sm:$0xff]  ;;  %v47_v12 = vlaneseq  ;;  %v22_v32 = vld [vmem:[%s242_s2] sm:$0xff]  ;;  %vm69_vm3 = vcmask 7168  }
   0x4   :  { %v23_v34 = vld [vmem:[%s242_s2 + $0x8] sm:$0xff]  ;;  %v84_v41 = vsel %vm69_vm3, %v22_v32, 0.0  ;;  %s140_s27 = scalar_lea.hbm %s243_s3, 16 }
   0x5   :  { %v48_v15 = vand.u32 127, %v47_v12  ;;  %v85_v42 = vsel %vm69_vm3, %v23_v34, 0.0  ;;  %p141_p0 = scmp.ne.s32.totalorder %s243_s3, %s140_s27  ;;  %p144_p1 = scmp.lt.u32.totalorder %s140_s27, %s243_s3 }
   0x6   :  { %v86_v44 = vadd.f32 %v85_v42, %v84_v41 }
   0x7   :  { %29 = vmax.xlane.f32.xlu0 %v28_v5  ;;  %53 = vperm.xlu1 %130, %v21_v6   ;;  %p146_p2 = pnand %p144_p1, %p141_p0 }
  0x82   :  { %v51_v14 = vpop.permute.xlu1 %50 }
  0x83   :  { %vm55_vm1 = vcmp.eq.s32.totalorder %v48_v15, %v51_v14 }
  0x86   :  { %v54_v17 = vpop.permute.xlu1 %53 }
  0x87   :  { %vm56_vm2 = vcmp.eq.s32.totalorder %v48_v15, %v54_v17 }
  0x90   :  { %v27_v7 = vpop.xlane.xlu0 %26 }
  0x91   :  { %v31_v8 = vsub.f32 %v18_v0, %v27_v7 }
  0x93   :  { %v33_v9 = vmul.f32 1.442695, %v31_v8  ;;  %v57_v19 = vsel %vm55_vm1, %v31_v8, 0.0 }
  0x94   :  { %v30_v10 = vpop.xlane.xlu0 %29  ;;  %v59_v21 = vsel %vm24_vm0, %v57_v19, 0.0 }
  0x95   :  { %132 = vpow2.f32 %v33_v9  ;;  %v32_v11 = vsub.f32 %v19_v1, %v30_v10 }
  0x97   :  { %v35_v13 = vmul.f32 1.442695, %v32_v11  ;;  %v58_v23 = vsel %vm56_vm2, %v32_v11, 0.0 }
  0x98   :  { %v62_v24 = vsel %vm24_vm0, %v58_v23, 0.0 }
  0x99   :  { %134 = vpow2.f32 %v35_v13 }
  0x9f   :  { %v133_v16 = vpop.eup %132 }
  0xa0   :  { %v37_v18 = vsel %vm24_vm0, %v133_v16, 0.0 }
  0xa1   :  { %38 = vadd.xlane.f32.xlu0 %v37_v18 }
  0xa3   :  { %v135_v20 = vpop.eup %134 }
  0xa4   :  { %v40_v22 = vsel %vm24_vm0, %v135_v20, 0.0 }
  0xa5   :  { %60 = vadd.xlane.f32.xlu0 %v59_v21  ;;  %41 = vadd.xlane.f32.xlu1 %v40_v22 }
  0xa9   :  { %63 = vadd.xlane.f32.xlu0 %v62_v24 }
 0x12e   :  { %v39_v25 = vpop.xlane.xlu0 %38 }
 0x12f   :  { %136 = vlog2.f32 %v39_v25 }
 0x132   :  { %v42_v26 = vpop.xlane.xlu1 %41  ;;  %v61_v28 = vpop.xlane.xlu0 %60 }
 0x133   :  { %138 = vlog2.f32 %v42_v26 }
 0x136   :  { %v64_v35 = vpop.xlane.xlu0 %63 }
 0x139   :  { %v137_v27 = vpop.eup %136 }
 0x13a   :  { %v44_v29 = vmul.f32 0.6931472, %v137_v27 }
 0x13c   :  { %v65_v30 = vsub.f32 %v44_v29, %v61_v28 }
 0x13d   :  { %v139_v31 = vpop.eup %138 }
 0x13e   :  { %v46_v33 = vmul.f32 0.6931472, %v139_v31  ;;  %v67_v36 = vmul.f32 %v65_v30, %v22_v32 }
 0x140   :  { %v66_v37 = vsub.f32 %v46_v33, %v64_v35  ;;  %v70_v39 = vsel %vm69_vm3, %v67_v36, 0.0 }
 0x142   :  { %v68_v38 = vmul.f32 %v66_v37, %v23_v34 }
 0x144   :  { %v71_v40 = vsel %vm69_vm3, %v68_v38, 0.0 }
 0x145   :  { %v72_v43 = vadd.f32 %v71_v40, %v70_v39 }
 0x147   :  { %73 = vadd.xlane.f32.xlu0 %v72_v43 }
 0x14b   :  { %87 = vadd.xlane.f32.xlu0 %v86_v44 }
 0x1d4   :  { %v74_v45 = vpop.xlane.xlu0 %73 }
 0x1d5   :  { %v75_v46 = vrot.slane %v74_v45, 4 }
 0x1d7   :  { %v76_v47 = vadd.f32 %v75_v46, %v74_v45 }
 0x1d8   :  { %v88_v48 = vpop.xlane.xlu0 %87 }
 0x1d9   :  { %v77_v49 = vrot.slane %v76_v47, 2  ;;  %v89_v50 = vrot.slane %v88_v48, 4 }
 0x1db   :  { %v90_v51 = vadd.f32 %v89_v50, %v88_v48  ;;  %v78_v52 = vadd.f32 %v77_v49, %v76_v47 }
 0x1dd   :  { %v91_v53 = vrot.slane %v90_v51, 2  ;;  %v79_v54 = vrot.slane %v78_v52, 1 }
 0x1df   :  { %v92_v55 = vadd.f32 %v91_v53, %v90_v51  ;;  %v80_v56 = vadd.f32 %v79_v54, %v78_v52 }
 0x1e1   :  { %123 = vpush %v80_v56  ;;  %v93_v57 = vrot.slane %v92_v55, 1 }
 0x1e3   :  { %v94_v58 = vadd.f32 %v93_v57, %v92_v55 }
 0x1e5   :  { %125 = vpush %v94_v58 }
 0x212   :  { %s124_s2 = spop %123 }
 0x213   :  { %83 = sst [smem:[#allocation2]] %s124_s2 }
 0x214   :  { %149 = shalt.err (!%p146_p2)
}
 0x215   :  { %s165_s6 = smov [#allocation2]   ;;  %s150_s12 = scalar_lea.hbm %s244_s4, 16 }
 0x216   :  { %105 = dma.smem_to_hbm %s165_s6, 16, %s243_s3, [#allocation3]  }
 0x217   :  { %s126_s9 = spop %125  ;;  %p151_p3 = scmp.ne.s32.totalorder %s244_s4, %s150_s12 }
 0x218   :  { %97 = sst [smem:[#allocation4]] %s126_s9  ;;  %p154_p4 = scmp.lt.u32.totalorder %s150_s12, %s244_s4 }
 0x21a   :  { %p156_p5 = pnand %p154_p4, %p151_p3 }
 0x21c   :  { %159 = shalt.err (!%p156_p5)
}
 0x21d   :  { %s166_s17 = smov [#allocation4]  }
 0x21e   :  { %113 = dma.smem_to_hbm %s166_s17, 16, %s244_s4, [#allocation5]  }
 0x21f   :  { %160 = dma.done.wait [#allocation3], 16  }
 0x220   :  { %161 = vsyncadd [#allocation3], 4294967280 }
 0x221   :  { %162 = dma.done.wait [#allocation5], 16  }
 0x222   :  { %163 = vsyncadd [#allocation5], 4294967280 }
 0x223   :  { %120 = sfence }
 0x224   :  { %121 = vsyncpa [#allocation3], 1 }
 0x225   :  { %122 = vsyncpa [#allocation5], 1 }

</bundles_post_ra>
